<compile_context>
chip_gen: v5e
topology: v5e:2x2
jax: 0.10.0
libtpu: 0.0.40
codegen_flags: <defaults>
</compile_context>

<pallas_src>
import jax
import jax.numpy as jnp
from jax.experimental import pallas as pl
from jax.experimental.pallas import tpu as pltpu

LN_EPS = 1e-5        # torch.nn.LayerNorm default
L2_EPS = 1e-12       # torch F.normalize default

_MiB = 1024 * 1024


# --------------------------- shared in-kernel math ---------------------------

def _ln_linear_l2(x, g, b, w, wb):
    """LayerNorm (f32 stats) -> Linear (bf16 MXU, f32 acc) -> L2 normalize."""
    x = x.astype(jnp.float32)
    mean = jnp.mean(x, axis=-1, keepdims=True)
    xc = x - mean
    var = jnp.mean(xc * xc, axis=-1, keepdims=True)
    xn = xc * jax.lax.rsqrt(var + LN_EPS)
    xn = xn * g + b
    y = jnp.dot(xn.astype(w.dtype), w, preferred_element_type=jnp.float32)
    y = y + wb
    # y / max(||y||, eps) == y * rsqrt(max(||y||^2, eps^2))  (EUP rsqrt)
    ss = jnp.sum(y * y, axis=-1, keepdims=True)
    return y * jax.lax.rsqrt(jnp.maximum(ss, L2_EPS * L2_EPS))


# --------------------------- kernels ----------------------------------------

def _project_kernel(x_ref, g_ref, b_ref, w_ref, wb_ref, o32_ref, o16_ref):
    """One batch tile: LN -> Linear -> L2, emits f32 (user) + bf16 (matmul) copies."""
    y = _ln_linear_l2(x_ref[...], g_ref[...], b_ref[...], w_ref[...], wb_ref[...])
    o32_ref[...] = y
    o16_ref[...] = y.astype(jnp.bfloat16)


def _logits_kernel(sb_ref, t_ref, i_ref, o_ref):
    """logits tile = text_tile(bf16) @ image_tile(bf16)^T * scale + bias.

    sb_ref: SMEM f32[2] = [exp(logit_scale), logit_bias]
    """
    sim = jax.lax.dot_general(
        t_ref[...], i_ref[...],
        dimension_numbers=(((1,), (1,)), ((), ())),   # contract last dims, no .T
        preferred_element_type=jnp.float32)
    o_ref[...] = sim * sb_ref[0] + sb_ref[1]


def _fused_kernel(sb_ref, img_ref, txt_ref,
                  vg_ref, vb_ref, vw_ref, vwb_ref,
                  tg_ref, tb_ref, tw_ref, twb_ref,
                  nimg_ref, ntxt_ref, logits_ref):
    """Whole small-batch forward in one call on VMEM-resident data."""
    ni = _ln_linear_l2(img_ref[...], vg_ref[...], vb_ref[...], vw_ref[...], vwb_ref[...])
    nt = _ln_linear_l2(txt_ref[...], tg_ref[...], tb_ref[...], tw_ref[...], twb_ref[...])
    nimg_ref[...] = ni
    ntxt_ref[...] = nt
    sim = jax.lax.dot_general(
        nt.astype(jnp.bfloat16), ni.astype(jnp.bfloat16),
        dimension_numbers=(((1,), (1,)), ((), ())),
        preferred_element_type=jnp.float32)
    logits_ref[...] = sim * sb_ref[0] + sb_ref[1]


# --------------------------- helpers -----------------------------------------

def _pick_batch_tile(n, preferred):
    """Sublane (batch) tile.  Prefer `preferred`, but when n <= preferred split
    into >=2 sublane-aligned tiles so a 'parallel' grid axis can shard across
    v7x's two TensorCores."""
    if n > preferred:
        return preferred
    if n >= 16:
        half = (n + 1) // 2
        return max(8, ((half + 7) // 8) * 8)
    return n


def _vmem_limit(est_bytes):
    """Scoped-VMEM limit: generous vs. the per-chip defaults, < v7x 64 MiB."""
    return int(min(max(32 * _MiB, est_bytes + 8 * _MiB), 56 * _MiB))


def _scale_bias_smem(exp_scale, logit_bias):
    return jnp.stack([jnp.asarray(exp_scale, jnp.float32),
                      jnp.asarray(logit_bias, jnp.float32)])


# --------------------------- tiled wrappers -----------------------------------

def project_features(x, gamma, beta, w, wb, *, tile_m=256):
    """LayerNorm + Linear + L2-normalize, tiled over batch.

    Returns (f32 features, bf16 features) -- the bf16 copy feeds compute_logits
    without an extra HBM f32 round trip / in-kernel cast.
    """
    B, D_in = x.shape
    D_out = w.shape[1]
    tm = _pick_batch_tile(B, tile_m)
    grid = (pl.cdiv(B, tm),)

    gamma2 = gamma.reshape(1, D_in).astype(jnp.float32)
    beta2 = beta.reshape(1, D_in).astype(jnp.float32)
    wb2 = wb.reshape(1, D_out).astype(jnp.float32)
    w_bf16 = w.astype(jnp.bfloat16)

    xsz = jnp.dtype(x.dtype).itemsize
    est = (tm * D_in * xsz * 2            # streamed input, double-buffered
           + D_in * D_out * 2 * 2         # resident bf16 weight (2 buffers)
           + (2 * D_in + D_out) * 4 * 2   # LN/bias params
           + tm * D_out * (4 + 2) * 2     # f32 + bf16 output tiles
           + tm * D_in * 4 * 2)           # in-kernel f32 temporaries headroom

    return pl.pallas_call(
        _project_kernel,
        out_shape=(jax.ShapeDtypeStruct((B, D_out), jnp.float32),
                   jax.ShapeDtypeStruct((B, D_out), jnp.bfloat16)),
        grid=grid,
        in_specs=[
            pl.BlockSpec((tm, D_in), lambda i: (i, 0)),      # x tile streams (native dtype)
            pl.BlockSpec((1, D_in), lambda i: (0, 0)),       # gamma (invariant)
            pl.BlockSpec((1, D_in), lambda i: (0, 0)),       # beta  (invariant)
            pl.BlockSpec((D_in, D_out), lambda i: (0, 0)),   # weight (invariant)
            pl.BlockSpec((1, D_out), lambda i: (0, 0)),      # bias   (invariant)
        ],
        out_specs=(pl.BlockSpec((tm, D_out), lambda i: (i, 0)),
                   pl.BlockSpec((tm, D_out), lambda i: (i, 0))),
        compiler_params=pltpu.CompilerParams(
            dimension_semantics=("parallel",),
            vmem_limit_bytes=_vmem_limit(est)),
    )(x, gamma2, beta2, w_bf16, wb2)


def compute_logits(text_bf16, image_bf16, exp_scale, logit_bias,
                   *, tile_t=256, tile_i=1024, resident_budget=8 * _MiB):
    """logits_per_text = text @ image.T * exp(logit_scale) + logit_bias.

    Operands are bf16 (from project_features).  The image operand is kept fully
    VMEM-resident when it fits (single step along the j axis), otherwise tiled
    in lane-dense multiples of 128.
    """
    Bt, D = text_bf16.shape
    Bi = image_bf16.shape[0]
    tm = _pick_batch_tile(Bt, tile_t)
    if Bi * D * 2 <= resident_budget:
        tn = Bi                                  # resident: j axis has 1 step
    else:
        tn = tile_i if Bi > tile_i else Bi
    grid = (pl.cdiv(Bt, tm), pl.cdiv(Bi, tn))

    sb = _scale_bias_smem(exp_scale, logit_bias)
    est = (tm * D * 2 * 2 + tn * D * 2 * 2 + tm * tn * 4 * 2)

    return pl.pallas_call(
        _logits_kernel,
        out_shape=jax.ShapeDtypeStruct((Bt, Bi), jnp.float32),
        grid=grid,
        in_specs=[
            pl.BlockSpec(memory_space=pltpu.MemorySpace.SMEM),   # [scale, bias]
            pl.BlockSpec((tm, D), lambda i, j: (i, 0)),
            pl.BlockSpec((tn, D), lambda i, j: (j, 0)),
        ],
        out_specs=pl.BlockSpec((tm, tn), lambda i, j: (i, j)),
        compiler_params=pltpu.CompilerParams(
            dimension_semantics=("parallel", "parallel"),
            vmem_limit_bytes=_vmem_limit(est)),
    )(sb, text_bf16, image_bf16)


# --------------------------- fused small-batch wrapper ------------------------

def _fused_vmem_estimate(Bi, Dv, Bt, Dt, Dout, img_bytes, txt_bytes):
    feats = Bi * Dv * img_bytes + Bt * Dt * txt_bytes
    weights = (Dv + Dt) * Dout * 2
    ln = ((Dv + Dt) * 2 + Dout * 2) * 4
    outs = (Bi + Bt) * Dout * 4 + Bt * Bi * 4
    scratch = (Bi * Dv + Bt * Dt) * 4 * 2     # f32 LN temporaries
    return feats + weights + ln + outs + scratch


def _fused_forward(image_features, text_features, params, exp_scale, logit_bias):
    Bi, Dv = image_features.shape
    Bt, Dt = text_features.shape
    Dout = params["v_w"].shape[1]

    sb = _scale_bias_smem(exp_scale, logit_bias)
    vg = params["v_ln_gamma"].reshape(1, Dv).astype(jnp.float32)
    vb = params["v_ln_beta"].reshape(1, Dv).astype(jnp.float32)
    vw = params["v_w"].astype(jnp.bfloat16)
    vwb = params["v_b"].reshape(1, Dout).astype(jnp.float32)
    tg = params["t_ln_gamma"].reshape(1, Dt).astype(jnp.float32)
    tb = params["t_ln_beta"].reshape(1, Dt).astype(jnp.float32)
    tw = params["t_w"].astype(jnp.bfloat16)
    twb = params["t_b"].reshape(1, Dout).astype(jnp.float32)

    vmem = pl.BlockSpec(memory_space=pltpu.MemorySpace.VMEM)
    smem = pl.BlockSpec(memory_space=pltpu.MemorySpace.SMEM)

    norm_img, norm_txt, logits = pl.pallas_call(
        _fused_kernel,
        out_shape=(jax.ShapeDtypeStruct((Bi, Dout), jnp.float32),
                   jax.ShapeDtypeStruct((Bt, Dout), jnp.float32),
                   jax.ShapeDtypeStruct((Bt, Bi), jnp.float32)),
        in_specs=[smem, vmem, vmem,
                  vmem, vmem, vmem, vmem,
                  vmem, vmem, vmem, vmem],
        out_specs=(vmem, vmem, vmem),
        compiler_params=pltpu.CompilerParams(vmem_limit_bytes=48 * _MiB),
    )(sb, image_features, text_features, vg, vb, vw, vwb, tg, tb, tw, twb)
    return norm_img, norm_txt, logits


# --------------------------- top-level forward --------------------------------

def sail_forward(image_features, text_features, params, *, force_tiled=False):
    """SAILModel.forward with is_pre_encoded=True, linear_type='linear'."""
    exp_scale = jnp.exp(jnp.asarray(params["logit_scale"], jnp.float32))
    logit_bias = jnp.asarray(params["logit_bias"], jnp.float32)

    Bi, Dv = image_features.shape
    Bt, Dt = text_features.shape
    Dout = params["v_w"].shape[1]
    est = _fused_vmem_estimate(Bi, Dv, Bt, Dt, Dout,
                               jnp.dtype(image_features.dtype).itemsize,
                               jnp.dtype(text_features.dtype).itemsize)
    use_fused = (not force_tiled) and est <= 12 * _MiB and Bi <= 2048 and Bt <= 2048

    if use_fused:
        norm_img, norm_txt, logits_per_text = _fused_forward(
            image_features, text_features, params, exp_scale, logit_bias)
    else:
        norm_img, norm_img_bf16 = project_features(
            image_features,
            params["v_ln_gamma"], params["v_ln_beta"],
            params["v_w"], params["v_b"])
        norm_txt, norm_txt_bf16 = project_features(
            text_features,
            params["t_ln_gamma"], params["t_ln_beta"],
            params["t_w"], params["t_b"])
        logits_per_text = compute_logits(
            norm_txt_bf16, norm_img_bf16, exp_scale, logit_bias)

    return {
        "image_features": norm_img,
        "text_features": norm_txt,
        "logits_per_text": logits_per_text,
        "logit_scale": exp_scale,
        "logit_bias": logit_bias,
    }


# --------------------------- reference (pure JAX) ------------------------------
# Mirrors the kernel's mixed precision (bf16 matmul operands, f32 accumulation).

def _ref_project(x, g, b, w, wb):
    x = x.astype(jnp.float32)
    mean = jnp.mean(x, axis=-1, keepdims=True)
    var = jnp.mean((x - mean) ** 2, axis=-1, keepdims=True)
    xn = (x - mean) / jnp.sqrt(var + LN_EPS) * g + b
    y = jnp.dot(xn.astype(jnp.bfloat16), w.astype(jnp.bfloat16),
                preferred_element_type=jnp.float32) + wb
    n = jnp.sqrt(jnp.sum(y * y, axis=-1, keepdims=True))
    return y / jnp.maximum(n, L2_EPS)


def _ref_forward(img, txt, p):
    ni = _ref_project(img, p["v_ln_gamma"], p["v_ln_beta"], p["v_w"], p["v_b"])
    nt = _ref_project(txt, p["t_ln_gamma"], p["t_ln_beta"], p["t_w"], p["t_b"])
    logits = jnp.dot(nt.astype(jnp.bfloat16), ni.astype(jnp.bfloat16).T,
                     preferred_element_type=jnp.float32)
    logits = logits * jnp.exp(p["logit_scale"]) + p["logit_bias"]
    return ni, nt, logits


# --------------------------- init + main ---------------------------------------

def make_params(key, vision_dim, text_dim, target_dim,
                logit_scale=10.0, logit_bias=-10.0):
    k1, k2 = jax.random.split(key)

    def xavier(k, fan_in, fan_out):
        bound = (6.0 / (fan_in + fan_out)) ** 0.5
        return jax.random.uniform(k, (fan_in, fan_out), jnp.float32,
                                  minval=-bound, maxval=bound)

    return {
        "v_ln_gamma": jnp.ones((vision_dim,), jnp.float32),
        "v_ln_beta": jnp.zeros((vision_dim,), jnp.float32),
        "v_w": xavier(k1, vision_dim, target_dim).astype(jnp.bfloat16),
        "v_b": jnp.zeros((target_dim,), jnp.float32),
        "t_ln_gamma": jnp.ones((text_dim,), jnp.float32),
        "t_ln_beta": jnp.zeros((text_dim,), jnp.float32),
        "t_w": xavier(k2, text_dim, target_dim).astype(jnp.bfloat16),
        "t_b": jnp.zeros((target_dim,), jnp.float32),
        "logit_scale": jnp.float32(jnp.log(logit_scale)),
        "logit_bias": jnp.float32(logit_bias),
    }


def _check(name, got, want, atol, rtol):
    assert jnp.allclose(got, want, atol=atol, rtol=rtol), (
        name, float(jnp.max(jnp.abs(got - want))))


if __name__ == "__main__":
    key = jax.random.PRNGKey(0)
    kp, ki, kt, kp2, ki2, kt2 = jax.random.split(key, 6)

    # ---- small-batch fused path (the __main__ "pre-encoded" regime) ----
    B_IMG, B_TXT = 16, 16
    VISION_DIM, TEXT_DIM, TARGET_DIM = 128, 256, 128
    params = make_params(kp, VISION_DIM, TEXT_DIM, TARGET_DIM)
    image_features = jax.random.normal(ki, (B_IMG, VISION_DIM), jnp.float32)
    text_features = jax.random.normal(kt, (B_TXT, TEXT_DIM), jnp.float32)

    out = sail_forward(image_features, text_features, params)
    jax.block_until_ready(out["logits_per_text"])

    ref_img, ref_txt, ref_logits = _ref_forward(image_features, text_features, params)
    _check("fused/image", out["image_features"], ref_img, 2e-3, 2e-3)
    _check("fused/text", out["text_features"], ref_txt, 2e-3, 2e-3)
    _check("fused/logits", out["logits_per_text"], ref_logits, 2e-2, 2e-2)

    # ---- tiled path (resident image operand in the logits kernel) ----
    B_IMG2, B_TXT2 = 320, 384
    V2, T2, TGT2 = 256, 384, 256
    params2 = make_params(kp2, V2, T2, TGT2)
    img2 = jax.random.normal(ki2, (B_IMG2, V2), jnp.float32)
    txt2 = jax.random.normal(kt2, (B_TXT2, T2), jnp.float32)

    out2 = sail_forward(img2, txt2, params2, force_tiled=True)
    jax.block_until_ready(out2["logits_per_text"])

    ref_img2, ref_txt2, ref_logits2 = _ref_forward(img2, txt2, params2)
    _check("tiled/image", out2["image_features"], ref_img2, 2e-3, 2e-3)
    _check("tiled/text", out2["text_features"], ref_txt2, 2e-3, 2e-3)
    _check("tiled/logits", out2["logits_per_text"], ref_logits2, 2e-2, 2e-2)

    # ---- also exercise the non-resident (lane-tiled image) logits fallback ----
    logits_fb = compute_logits(
        out2["text_features"].astype(jnp.bfloat16),
        out2["image_features"].astype(jnp.bfloat16),
        jnp.exp(params2["logit_scale"]), params2["logit_bias"],
        tile_i=128, resident_budget=0)
    jax.block_until_ready(logits_fb)
    _check("tiled/logits_fallback", logits_fb, ref_logits2, 2e-2, 2e-2)

    print("KERNEL_OK")
</pallas_src>

<mosaic_0001>
module attributes {stable_mosaic.version = 11 : i64} {
  func.func @_fused_kernel(%arg0: memref<2xf32, #tpu.memory_space<smem>>, %arg1: memref<16x128xf32, #tpu.memory_space<vmem>>, %arg2: memref<16x256xf32, #tpu.memory_space<vmem>>, %arg3: memref<1x128xf32, #tpu.memory_space<vmem>>, %arg4: memref<1x128xf32, #tpu.memory_space<vmem>>, %arg5: memref<128x128xbf16, #tpu.memory_space<vmem>>, %arg6: memref<1x128xf32, #tpu.memory_space<vmem>>, %arg7: memref<1x256xf32, #tpu.memory_space<vmem>>, %arg8: memref<1x256xf32, #tpu.memory_space<vmem>>, %arg9: memref<256x128xbf16, #tpu.memory_space<vmem>>, %arg10: memref<1x128xf32, #tpu.memory_space<vmem>>, %arg11: memref<16x128xf32, #tpu.memory_space<vmem>>, %arg12: memref<16x128xf32, #tpu.memory_space<vmem>>, %arg13: memref<16x16xf32, #tpu.memory_space<vmem>>) attributes {dimension_semantics = [], scalar_prefetch = 0 : i64, scratch_operands = 0 : i64, tpu.core_type = #tpu.core_type<tc>} {
    %c0 = arith.constant 0 : index
    %c0_0 = arith.constant 0 : index
    %0 = vector.load %arg1[%c0, %c0_0] : memref<16x128xf32, #tpu.memory_space<vmem>>, vector<16x128xf32>
    %c0_1 = arith.constant 0 : index
    %c0_2 = arith.constant 0 : index
    %1 = vector.load %arg3[%c0_1, %c0_2] : memref<1x128xf32, #tpu.memory_space<vmem>>, vector<1x128xf32>
    %c0_3 = arith.constant 0 : index
    %c0_4 = arith.constant 0 : index
    %2 = vector.load %arg4[%c0_3, %c0_4] : memref<1x128xf32, #tpu.memory_space<vmem>>, vector<1x128xf32>
    %c0_5 = arith.constant 0 : index
    %c0_6 = arith.constant 0 : index
    %3 = vector.load %arg5[%c0_5, %c0_6] : memref<128x128xbf16, #tpu.memory_space<vmem>>, vector<128x128xbf16>
    %c0_7 = arith.constant 0 : index
    %c0_8 = arith.constant 0 : index
    %4 = vector.load %arg6[%c0_7, %c0_8] : memref<1x128xf32, #tpu.memory_space<vmem>>, vector<1x128xf32>
    %cst = arith.constant dense<0.000000e+00> : vector<16xf32>
    %5 = vector.multi_reduction <add>, %0, %cst [1] : vector<16x128xf32> to vector<16xf32>
    %6 = vector.shape_cast %5 : vector<16xf32> to vector<16x1xf32>
    %cst_9 = arith.constant 1.280000e+02 : f32
    %7 = vector.broadcast %cst_9 : f32 to vector<16x1xf32>
    %8 = arith.divf %6, %7 : vector<16x1xf32>
    %9 = vector.broadcast %8 : vector<16x1xf32> to vector<16x128xf32>
    %10 = arith.subf %0, %9 : vector<16x128xf32>
    %11 = arith.mulf %10, %10 : vector<16x128xf32>
    %cst_10 = arith.constant dense<0.000000e+00> : vector<16xf32>
    %12 = vector.multi_reduction <add>, %11, %cst_10 [1] : vector<16x128xf32> to vector<16xf32>
    %13 = vector.shape_cast %12 : vector<16xf32> to vector<16x1xf32>
    %cst_11 = arith.constant 1.280000e+02 : f32
    %14 = vector.broadcast %cst_11 : f32 to vector<16x1xf32>
    %15 = arith.divf %13, %14 : vector<16x1xf32>
    %cst_12 = arith.constant 9.99999974E-6 : f32
    %16 = vector.broadcast %cst_12 : f32 to vector<16x1xf32>
    %17 = arith.addf %15, %16 : vector<16x1xf32>
    %18 = math.rsqrt %17 : vector<16x1xf32>
    %19 = vector.broadcast %18 : vector<16x1xf32> to vector<16x128xf32>
    %20 = arith.mulf %10, %19 : vector<16x128xf32>
    %21 = vector.broadcast %1 : vector<1x128xf32> to vector<16x128xf32>
    %22 = arith.mulf %20, %21 : vector<16x128xf32>
    %23 = vector.broadcast %2 : vector<1x128xf32> to vector<16x128xf32>
    %24 = arith.addf %22, %23 : vector<16x128xf32>
    %25 = arith.truncf %24 : vector<16x128xf32> to vector<16x128xbf16>
    %cst_13 = arith.constant dense<0.000000e+00> : vector<16x128xf32>
    %26 = tpu.matmul %25, %3, %cst_13 {dimension_numbers = #tpu.dot_dimension_numbers<[1], [0], [0], [1], [0, 0, 1, 1], [], []>} : vector<16x128xbf16>, vector<128x128xbf16>, vector<16x128xf32> -> vector<16x128xf32>
    %27 = vector.broadcast %4 : vector<1x128xf32> to vector<16x128xf32>
    %28 = arith.addf %26, %27 : vector<16x128xf32>
    %29 = arith.mulf %28, %28 : vector<16x128xf32>
    %cst_14 = arith.constant dense<0.000000e+00> : vector<16xf32>
    %30 = vector.multi_reduction <add>, %29, %cst_14 [1] : vector<16x128xf32> to vector<16xf32>
    %31 = vector.shape_cast %30 : vector<16xf32> to vector<16x1xf32>
    %cst_15 = arith.constant 1.000000e-24 : f32
    %32 = vector.broadcast %cst_15 : f32 to vector<16x1xf32>
    %33 = arith.maximumf %31, %32 : vector<16x1xf32>
    %34 = math.rsqrt %33 : vector<16x1xf32>
    %35 = vector.broadcast %34 : vector<16x1xf32> to vector<16x128xf32>
    %36 = arith.mulf %28, %35 : vector<16x128xf32>
    %c0_16 = arith.constant 0 : index
    %c0_17 = arith.constant 0 : index
    %37 = vector.load %arg2[%c0_16, %c0_17] : memref<16x256xf32, #tpu.memory_space<vmem>>, vector<16x256xf32>
    %c0_18 = arith.constant 0 : index
    %c0_19 = arith.constant 0 : index
    %38 = vector.load %arg7[%c0_18, %c0_19] : memref<1x256xf32, #tpu.memory_space<vmem>>, vector<1x256xf32>
    %c0_20 = arith.constant 0 : index
    %c0_21 = arith.constant 0 : index
    %39 = vector.load %arg8[%c0_20, %c0_21] : memref<1x256xf32, #tpu.memory_space<vmem>>, vector<1x256xf32>
    %c0_22 = arith.constant 0 : index
    %c0_23 = arith.constant 0 : index
    %40 = vector.load %arg9[%c0_22, %c0_23] : memref<256x128xbf16, #tpu.memory_space<vmem>>, vector<256x128xbf16>
    %c0_24 = arith.constant 0 : index
    %c0_25 = arith.constant 0 : index
    %41 = vector.load %arg10[%c0_24, %c0_25] : memref<1x128xf32, #tpu.memory_space<vmem>>, vector<1x128xf32>
    %cst_26 = arith.constant dense<0.000000e+00> : vector<16xf32>
    %42 = vector.multi_reduction <add>, %37, %cst_26 [1] : vector<16x256xf32> to vector<16xf32>
    %43 = vector.shape_cast %42 : vector<16xf32> to vector<16x1xf32>
    %cst_27 = arith.constant 2.560000e+02 : f32
    %44 = vector.broadcast %cst_27 : f32 to vector<16x1xf32>
    %45 = arith.divf %43, %44 : vector<16x1xf32>
    %46 = vector.broadcast %45 : vector<16x1xf32> to vector<16x256xf32>
    %47 = arith.subf %37, %46 : vector<16x256xf32>
    %48 = arith.mulf %47, %47 : vector<16x256xf32>
    %cst_28 = arith.constant dense<0.000000e+00> : vector<16xf32>
    %49 = vector.multi_reduction <add>, %48, %cst_28 [1] : vector<16x256xf32> to vector<16xf32>
    %50 = vector.shape_cast %49 : vector<16xf32> to vector<16x1xf32>
    %cst_29 = arith.constant 2.560000e+02 : f32
    %51 = vector.broadcast %cst_29 : f32 to vector<16x1xf32>
    %52 = arith.divf %50, %51 : vector<16x1xf32>
    %cst_30 = arith.constant 9.99999974E-6 : f32
    %53 = vector.broadcast %cst_30 : f32 to vector<16x1xf32>
    %54 = arith.addf %52, %53 : vector<16x1xf32>
    %55 = math.rsqrt %54 : vector<16x1xf32>
    %56 = vector.broadcast %55 : vector<16x1xf32> to vector<16x256xf32>
    %57 = arith.mulf %47, %56 : vector<16x256xf32>
    %58 = vector.broadcast %38 : vector<1x256xf32> to vector<16x256xf32>
    %59 = arith.mulf %57, %58 : vector<16x256xf32>
    %60 = vector.broadcast %39 : vector<1x256xf32> to vector<16x256xf32>
    %61 = arith.addf %59, %60 : vector<16x256xf32>
    %62 = arith.truncf %61 : vector<16x256xf32> to vector<16x256xbf16>
    %cst_31 = arith.constant dense<0.000000e+00> : vector<16x128xf32>
    %63 = tpu.matmul %62, %40, %cst_31 {dimension_numbers = #tpu.dot_dimension_numbers<[1], [0], [0], [1], [0, 0, 1, 1], [], []>} : vector<16x256xbf16>, vector<256x128xbf16>, vector<16x128xf32> -> vector<16x128xf32>
    %64 = vector.broadcast %41 : vector<1x128xf32> to vector<16x128xf32>
    %65 = arith.addf %63, %64 : vector<16x128xf32>
    %66 = arith.mulf %65, %65 : vector<16x128xf32>
    %cst_32 = arith.constant dense<0.000000e+00> : vector<16xf32>
    %67 = vector.multi_reduction <add>, %66, %cst_32 [1] : vector<16x128xf32> to vector<16xf32>
    %68 = vector.shape_cast %67 : vector<16xf32> to vector<16x1xf32>
    %cst_33 = arith.constant 1.000000e-24 : f32
    %69 = vector.broadcast %cst_33 : f32 to vector<16x1xf32>
    %70 = arith.maximumf %68, %69 : vector<16x1xf32>
    %71 = math.rsqrt %70 : vector<16x1xf32>
    %72 = vector.broadcast %71 : vector<16x1xf32> to vector<16x128xf32>
    %73 = arith.mulf %65, %72 : vector<16x128xf32>
    %c0_34 = arith.constant 0 : index
    %c0_35 = arith.constant 0 : index
    %74 = vector.load %arg11[%c0_34, %c0_35] : memref<16x128xf32, #tpu.memory_space<vmem>>, vector<16x128xf32>
    tpu.vector_store %arg11[%c0_34, %c0_35], %36 {strides = array<i32>} : memref<16x128xf32, #tpu.memory_space<vmem>>, vector<16x128xf32>,
    %c0_36 = arith.constant 0 : index
    %c0_37 = arith.constant 0 : index
    %75 = vector.load %arg12[%c0_36, %c0_37] : memref<16x128xf32, #tpu.memory_space<vmem>>, vector<16x128xf32>
    tpu.vector_store %arg12[%c0_36, %c0_37], %73 {strides = array<i32>} : memref<16x128xf32, #tpu.memory_space<vmem>>, vector<16x128xf32>,
    %76 = arith.truncf %73 : vector<16x128xf32> to vector<16x128xbf16>
    %77 = arith.truncf %36 : vector<16x128xf32> to vector<16x128xbf16>
    %cst_38 = arith.constant dense<0.000000e+00> : vector<16x16xf32>
    %78 = tpu.matmul %76, %77, %cst_38 {dimension_numbers = #tpu.dot_dimension_numbers<[1], [1], [0], [0], [0, 0, 1, 0], [], []>} : vector<16x128xbf16>, vector<16x128xbf16>, vector<16x16xf32> -> vector<16x16xf32>
    %c0_39 = arith.constant 0 : index
    %79 = memref.load %arg0[%c0_39] : memref<2xf32, #tpu.memory_space<smem>>
    %80 = vector.broadcast %79 : f32 to vector<16x16xf32>
    %81 = arith.mulf %78, %80 : vector<16x16xf32>
    %c1 = arith.constant 1 : index
    %82 = memref.load %arg0[%c1] : memref<2xf32, #tpu.memory_space<smem>>
    %83 = vector.broadcast %82 : f32 to vector<16x16xf32>
    %84 = arith.addf %81, %83 : vector<16x16xf32>
    %c0_40 = arith.constant 0 : index
    %c0_41 = arith.constant 0 : index
    %85 = vector.load %arg13[%c0_40, %c0_41] : memref<16x16xf32, #tpu.memory_space<vmem>>, vector<16x16xf32>
    tpu.vector_store %arg13[%c0_40, %c0_41], %84 {strides = array<i32>} : memref<16x16xf32, #tpu.memory_space<vmem>>, vector<16x16xf32>,
    return
  }
}

</mosaic_0001>

<bundles_post_ra>
// kernel: tpu_custom_call.1
= control target key start
LH: loop header
LB: loop body
LE: loop exit
PB: predicated region body
PF: predicated region fallthrough
CT: control target
= control target key end

     0   :  { %19 = vsyncpa [#allocation5], 0  ;;  %s1277_s0 = inlined_call_operand.hbm [shape: f32[2], index: 0, kind: input, shape index: {}]   ;;  %s1278_s1 = inlined_call_operand.hbm [shape: f32[16,128], index: 1, kind: input, shape index: {}]   ;;  %s1279_s2 = inlined_call_operand.hbm [shape: f32[16,256], index: 2, kind: input, shape index: {}]   ;;  %s1280_s3 = inlined_call_operand.hbm [shape: f32[1,128], index: 3, kind: input, shape index: {}]   ;;  %s1281_s4 = inlined_call_operand.hbm [shape: f32[1,128], index: 4, kind: input, shape index: {}]   ;;  %s1282_s5 = inlined_call_operand.hbm [shape: bf16[128,128], index: 5, kind: input, shape index: {}]   ;;  %s1283_s6 = inlined_call_operand.vmem [shape: f32[1,128], index: 6, kind: input, shape index: {}]   ;;  %s1284_s7 = inlined_call_operand.vmem [shape: f32[1,256], index: 7, kind: input, shape index: {}]   ;;  %s1285_s8 = inlined_call_operand.vmem [shape: f32[1,256], index: 8, kind: input, shape index: {}]   ;;  %s1286_s9 = inlined_call_operand.hbm [shape: bf16[256,128], index: 9, kind: input, shape index: {}]   ;;  %s1287_s10 = inlined_call_operand.vmem [shape: f32[1,128], index: 10, kind: input, shape index: {}]   ;;  %s1288_s11 = inlined_call_operand.hbm [shape: f32[16,128], index: 11, kind: output, shape index: {0}]   ;;  %s1289_s12 = inlined_call_operand.hbm [shape: f32[16,128], index: 12, kind: output, shape index: {1}]   ;;  %s1290_s13 = inlined_call_operand.hbm [shape: f32[16,16], index: 13, kind: output, shape index: {2}]  }
   0x1   :  { %20 = vsyncpa [#allocation3], 0 }
   0x2   :  { %21 = vsyncpa [#allocation8], 0 }
   0x3   :  { %22 = vsyncpa [#allocation11], 0 }
   0x4   :  { %23 = vsyncpa [#allocation14], 0 }
   0x5   :  { %24 = vsyncpa [#allocation4], 0  ;;  %s52_s27 = sshll.u32 %s1279_s2, 4  ;;  %s53_s27 = int_to_ptr.hbm [resolvable:$true] %s52_s27 }
   0x6   :  { %25 = vsyncpa [#allocation17], 0  ;;  %s1088_s28 = smov [#allocation7]   ;;  %s77_s15 = sshll.u32 %s1281_s4, 4  ;;  %s78_s15 = int_to_ptr.hbm [resolvable:$true] %s77_s15 }
   0x7   :  { %s54_s29 = sshll.u32 %s1088_s28, 4  ;;  %s1089_s16 = smov 256   ;;  %s55_s29 = int_to_ptr.vmem [resolvable:$true] %s54_s29 }
   0x8   :  { %s1090_s17 = smov 16   ;;  %s1091_s18 = smov [#allocation10]  }
   0x9   :  { %60 = dma.hbm_to_vmem [thread:$0]  %s53_s27, 512, %s55_s29, [#allocation8], %s1089_s16, %s1089_s16, %s1090_s17  }
   0xa   :  { %s79_s19 = sshll.u32 %s1091_s18, 4  ;;  %s31_s22 = sshll.u32 %s1277_s0, 4  ;;  %s80_s19 = int_to_ptr.vmem [resolvable:$true] %s79_s19  ;;  %s32_s22 = int_to_ptr.hbm [resolvable:$true] %s31_s22 }
   0xb   :  { %82 = dma.hbm_to_vmem [thread:$0]  %s78_s15, 16, %s80_s19, [#allocation11]  }
   0xc   :  { %s39_s24 = sshll.u32 %s1278_s1, 4  ;;  %s1092_s25 = smov [#allocation2]   ;;  %s40_s24 = int_to_ptr.hbm [resolvable:$true] %s39_s24 }
   0xd   :  { %34 = dma.hbm_to_smem %s32_s22, 16, %s1092_s25, [#allocation5]  }
   0xe   :  { %s1093_s4 = smov [#allocation6]   ;;  %s1094_s27 = smov 128  }
   0xf   :  { %s41_s26 = sshll.u32 %s1093_s4, 4  ;;  %s1095_s28 = smov 8   ;;  %s42_s26 = int_to_ptr.vmem [resolvable:$true] %s41_s26 }
  0x10   :  { %47 = dma.hbm_to_vmem [thread:$0]  %s40_s24, 256, %s42_s26, [#allocation3], %s1094_s27, %s1094_s27, %s1095_s28  }
  0x11   :  { %s66_s30 = sshll.u32 %s1280_s3, 4  ;;  %s1096_s14 = smov [#allocation9]   ;;  %s67_s30 = int_to_ptr.hbm [resolvable:$true] %s66_s30 }
  0x12   :  { %s68_s15 = sshll.u32 %s1096_s14, 4  ;;  %s87_s17 = sshll.u32 %s1282_s5, 4  ;;  %s69_s15 = int_to_ptr.vmem [resolvable:$true] %s68_s15  ;;  %s88_s17 = int_to_ptr.hbm [resolvable:$true] %s87_s17 }
  0x13   :  { %71 = dma.hbm_to_vmem [thread:$0]  %s67_s30, 16, %s69_s15, [#allocation8]  }
  0x14   :  { %s1097_s18 = smov [#allocation12]   ;;  %s1098_s20 = smov 64  }
  0x15   :  { %s89_s19 = sshll.u32 %s1097_s18, 4  ;;  %s1099_s21 = smov 4   ;;  %s90_s19 = int_to_ptr.vmem [resolvable:$true] %s89_s19 }
  0x16   :  { %95 = dma.hbm_to_vmem [thread:$0]  %s88_s17, 1024, %s90_s19, [#allocation11], %s1098_s20, %s1098_s20, %s1099_s21  }
  0x17   :  { %s106_s3 = sshll.u32 %s1286_s9, 4  ;;  %s1100_s23 = smov [#allocation13]   ;;  %s107_s3 = int_to_ptr.hbm [resolvable:$true] %s106_s3 }
  0x18   :  { %s108_s24 = sshll.u32 %s1100_s23, 4  ;;  %s109_s24 = int_to_ptr.vmem [resolvable:$true] %s108_s24 }
  0x19   :  { %114 = dma.hbm_to_vmem [thread:$0]  %s107_s3, 2048, %s109_s24, [#allocation14], %s1098_s20, %s1098_s20, %s1099_s21  }
  0x1a   :  { %1074 = dma.done.wait [#allocation5], 16  }
  0x1b   :  { %1075 = vsyncadd [#allocation5], 4294967280 }
  0x1c   :  { %1076 = dma.done.wait [#allocation3], 256  }
  0x1d   :  { %1077 = vsyncadd [#allocation3], 4294967040 }
  0x1e   :  { %1078 = dma.done.wait [#allocation8], 528  }
  0x1f   :  { %1079 = vsyncadd [#allocation8], 4294966768 }
  0x20   :  { %1080 = dma.done.wait [#allocation11], 1040  }
  0x21   :  { %1081 = vsyncadd [#allocation11], 4294966256 }
  0x22   :  { %1082 = dma.done.wait [#allocation14], 2048  }
  0x23   :  { %1083 = vsyncadd [#allocation14], 4294965248 }
  0x24   :  { %145 = sfence }
  0x25   :  { %v147_v0 = vld [vmem:[#allocation6] sm:$0xff]  ;;  %v321_v1 = vld [vmem:[#allocation7] sm:$0xff]  ;;  %v322_v2 = vld [vmem:[#allocation7 + $0x8] sm:$0xff]  ;;  %v1101_v8 = vmov 128.0   ;;  %v1102_v9 = vmov 256.0   ;;  %s644_s14 = sshll.u32 %s1289_s12, 4  ;;  %s645_s14 = int_to_ptr.hbm [resolvable:$true] %s644_s14 }
  0x26   :  { %168 = vadd.xlane.f32.xlu1 %v147_v0  ;;  %v360_v3 = vadd.f32 %v322_v2, %v321_v1  ;;  %v323_v4 = vld [vmem:[#allocation7 + $0x10] sm:$0xff]  ;;  %v324_v5 = vld [vmem:[#allocation7 + $0x18] sm:$0xff]  ;;  %826 = vrcp.f32 %v1101_v8  ;;  %v784_v51 = vld [vmem:[#allocation12 + $0x20] sm:$0xff]  ;;  %s631_s16 = sshll.u32 %s1288_s11, 4  ;;  %s1104_s17 = smov [#allocation15]   ;;  %s632_s16 = int_to_ptr.hbm [resolvable:$true] %s631_s16 }
  0x27   :  { %v148_v6 = vld [vmem:[#allocation6 + $0x8] sm:$0xff]  ;;  %v363_v7 = vadd.f32 %v324_v5, %v323_v4  ;;  %828 = vrcp.f32 %v1102_v9  ;;  %v785_v48 = vld [vmem:[#allocation12 + $0x28] sm:$0xff]  ;;  %v792_v55 = vld [vmem:[#allocation13 + $0x20] sm:$0xff]  ;;  %s629_s18 = sshll.u32 %s1104_s17, 4  ;;  %s614_s19 = sld [smem:[#allocation2]]  ;;  %s630_s18 = int_to_ptr.vmem [resolvable:$true] %s629_s18 }
  0x28   :  { %361 = vadd.xlane.f32.xlu0 %v360_v3  ;;  %v787_v44 = vld [vmem:[#allocation12 + $0x38] sm:$0xff]  ;;  %v786_v45 = vld [vmem:[#allocation12 + $0x30] sm:$0xff]  ;;  %v793_v52 = vld [vmem:[#allocation13 + $0x28] sm:$0xff]  ;;  %s779_s12 = sld [smem:[#allocation2 + $0x1]]  ;;  %s1105_s20 = smov [#allocation18]  }
  0x29   :  { %277 = vmatpush.bf16.msra.mxu0 %v787_v44  ;;  %v795_v46 = vld [vmem:[#allocation13 + $0x38] sm:$0xff]  ;;  %v794_v49 = vld [vmem:[#allocation13 + $0x30] sm:$0xff]  ;;  %v801_v53 = vld [vmem:[#allocation13 + $0x68] sm:$0xff]  ;;  %s655_s11 = sshll.u32 %s1105_s20, 4  ;;  %s657_s2 = sshll.u32 %s1290_s13, 4  ;;  %s656_s11 = int_to_ptr.vmem [resolvable:$true] %s655_s11  ;;  %s658_s2 = int_to_ptr.hbm [resolvable:$true] %s657_s2 }
  0x2a   :  { %v803_v47 = vld [vmem:[#allocation13 + $0x78] sm:$0xff]  ;;  %536 = vmatpush.bf16.msra.mxu1 %v795_v46  ;;  %v802_v50 = vld [vmem:[#allocation13 + $0x70] sm:$0xff]  ;;  %v800_v56 = vld [vmem:[#allocation13 + $0x60] sm:$0xff] }
  0x2b   :  { %550 = vmatpush.bf16.msra.mxu2 %v803_v47  ;;  %v783_v54 = vld [vmem:[#allocation12 + $0x18] sm:$0xff]  ;;  %v782_v57 = vld [vmem:[#allocation12 + $0x10] sm:$0xff]  ;;  %v781_v60 = vld [vmem:[#allocation12 + $0x8] sm:$0xff] }
  0x2c   :  { %v827_v10 = vpop.eup %826  ;;  %v791_v58 = vld [vmem:[#allocation13 + $0x18] sm:$0xff]  ;;  %v790_v61 = vld [vmem:[#allocation13 + $0x10] sm:$0xff]  ;;  %v797_v3 = vld [vmem:[#allocation13 + $0x48] sm:$0xff] }
  0x2d   :  { %v829_v11 = vpop.eup %828  ;;  %v173_v12 = vmul.f32 128.0, %v827_v10  ;;  %vm177_vm0 = vweird.f32 %v827_v10  ;;  %278 = vmatpush.bf16.msra.mxu0 %v786_v45  ;;  %v799_v59 = vld [vmem:[#allocation13 + $0x58] sm:$0xff]  ;;  %v798_v62 = vld [vmem:[#allocation13 + $0x50] sm:$0xff]  ;;  %v796_v8 = vld [vmem:[#allocation13 + $0x40] sm:$0xff] }
  0x2e   :  { %170 = vadd.xlane.f32.xlu1 %v148_v6  ;;  %v367_v13 = vmul.f32 256.0, %v829_v11  ;;  %vm371_vm1 = vweird.f32 %v829_v11  ;;  %537 = vmatpush.bf16.msra.mxu1 %v794_v49  ;;  %v822_v44 = vld [vmem:[#allocation9] ss:$0 sm:$0xff]  ;;  %v325_v45 = vld [vmem:[%s1284_s7] sm:$0x3] }
  0x2f   :  { %v174_v14 = vsub.f32 1.0, %v173_v12  ;;  %551 = vmatpush.bf16.msra.mxu2 %v802_v50  ;;  %v418_v49 = vperm.slane %v325_v45, 0 }
  0x30   :  { %364 = vadd.xlane.f32.xlu0 %v363_v7  ;;  %v368_v15 = vsub.f32 1.0, %v367_v13  ;;  %v788_v7 = vld [vmem:[#allocation13] sm:$0xff] }
  0x31   :  { %v175_v16 = vmul.f32 %v827_v10, %v174_v14  ;;  %279 = vmatpush.bf16.msra.mxu0 %v785_v48 }
  0x32   :  { %v369_v17 = vmul.f32 %v829_v11, %v368_v15  ;;  %538 = vmatpush.bf16.msra.mxu1 %v793_v52 }
  0x33   :  { %v176_v18 = vadd.f32 %v827_v10, %v175_v16  ;;  %552 = vmatpush.bf16.msra.mxu2 %v801_v53  ;;  %v823_v53 = vld [vmem:[#allocation10] ss:$0 sm:$0xff] }
  0x34   :  { %v370_v19 = vadd.f32 %v829_v11, %v369_v17 }
  0x35   :  { %v1200_v20 = vsel %vm177_vm0, %v827_v10, %v176_v18  ;;  %280 = vmatpush.bf16.msra.mxu0 %v784_v51 }
  0x36   :  { %v1202_v22 = vsel %vm371_vm1, %v829_v11, %v370_v19  ;;  %539 = vmatpush.bf16.msra.mxu1 %v792_v55 }
  0x37   :  { %553 = vmatpush.bf16.msra.mxu2 %v800_v56 }
  0x39   :  { %281 = vmatpush.bf16.msra.mxu0 %v783_v54 }
  0x3a   :  { %540 = vmatpush.bf16.msra.mxu1 %v791_v58 }
  0x3b   :  { %554 = vmatpush.bf16.msra.mxu2 %v799_v59 }
  0x3d   :  { %282 = vmatpush.bf16.msra.mxu0 %v782_v57  ;;  %v419_v57 = vperm.slane %v325_v45, 1 }
  0x3e   :  { %541 = vmatpush.bf16.msra.mxu1 %v790_v61 }
  0x3f   :  { %555 = vmatpush.bf16.msra.mxu2 %v798_v62 }
  0x41   :  { %283 = vmatpush.bf16.msra.mxu0 %v781_v60 }
  0x43   :  { %556 = vmatpush.bf16.msra.mxu2 %v797_v3 }
  0x47   :  { %557 = vmatpush.bf16.msra.mxu2 %v796_v8 }
  0x99   :  { %v169_v21 = vpop.xlane.xlu1 %168 }
  0x9a   :  { %v179_v23 = vmul.f32 %v1200_v20, %v169_v21 }
  0x9b   :  { %v362_v24 = vpop.xlane.xlu0 %361 }
  0x9c   :  { %v373_v25 = vmul.f32 %v1202_v22, %v362_v24  ;;  %v1206_v26 = vsub.f32 %v147_v0, %v179_v23  ;;  %v780_v0 = vld [vmem:[#allocation12] sm:$0xff] }
  0x9d   :  { %284 = vmatpush.bf16.msra.mxu0 %v780_v0 }
  0x9e   :  { %v1208_v27 = vsub.f32 %v321_v1, %v373_v25  ;;  %v1210_v28 = vsub.f32 %v322_v2, %v373_v25  ;;  %v183_v29 = vmul.f32 %v1206_v26, %v1206_v26  ;;  %v789_v1 = vld [vmem:[#allocation13 + $0x8] sm:$0xff] }
  0x9f   :  { %542 = vmatpush.bf16.msra.mxu1 %v789_v1 }
  0xa0   :  { %185 = vadd.xlane.f32.xlu2 %v183_v29  ;;  %v379_v30 = vmul.f32 %v1208_v27, %v1208_v27  ;;  %v380_v31 = vmul.f32 %v1210_v28, %v1210_v28 }
  0xa1   :  { %v171_v32 = vpop.xlane.xlu1 %170 }
  0xa2   :  { %v180_v33 = vmul.f32 %v1200_v20, %v171_v32  ;;  %v383_v34 = vadd.f32 %v380_v31, %v379_v30 }
  0xa3   :  { %v365_v35 = vpop.xlane.xlu0 %364  ;;  %543 = vmatpush.bf16.msra.mxu1 %v788_v7 }
  0xa4   :  { %v1219_v36 = vsub.f32 %v148_v6, %v180_v33  ;;  %v374_v37 = vmul.f32 %v1202_v22, %v365_v35  ;;  %384 = vadd.xlane.f32.xlu0 %v383_v34 }
  0xa6   :  { %v1222_v38 = vsub.f32 %v323_v4, %v374_v37  ;;  %v1224_v39 = vsub.f32 %v324_v5, %v374_v37  ;;  %v184_v40 = vmul.f32 %v1219_v36, %v1219_v36 }
  0xa8   :  { %187 = vadd.xlane.f32.xlu2 %v184_v40  ;;  %v381_v41 = vmul.f32 %v1222_v38, %v1222_v38  ;;  %v382_v42 = vmul.f32 %v1224_v39, %v1224_v39 }
  0xaa   :  { %v386_v43 = vadd.f32 %v382_v42, %v381_v41 }
  0xac   :  { %387 = vadd.xlane.f32.xlu1 %v386_v43 }
 0x113   :  { %v186_v63 = vpop.xlane.xlu2 %185 }
 0x114   :  { %v189_v2 = vmul.f32 %v186_v63, %v1200_v20 }
 0x116   :  { %v191_v4 = vadd.f32 1e-05, %v189_v2 }
 0x117   :  { %v385_v5 = vpop.xlane.xlu0 %384 }
 0x118   :  { %830 = vrsqrt.f32 %v191_v4  ;;  %v389_v6 = vmul.f32 %v385_v5, %v1202_v22  ;;  %vm199_vm3 = vweird.f32 %v191_v4 }
 0x11a   :  { %v391_v9 = vadd.f32 1e-05, %v389_v6 }
 0x11b   :  { %v188_v10 = vpop.xlane.xlu2 %187 }
 0x11c   :  { %832 = vrsqrt.f32 %v391_v9  ;;  %v190_v11 = vmul.f32 %v188_v10, %v1200_v20  ;;  %vm399_vm6 = vweird.f32 %v391_v9 }
 0x11e   :  { %v831_v12 = vpop.eup %830  ;;  %v192_v13 = vadd.f32 1e-05, %v190_v11  ;;  %v824_v11 = vld [vmem:[%s1283_s6] ss:$0 sm:$0xff]  ;;  %s1103_s6 = smov [#allocation16]  }
 0x11f   :  { %v194_v14 = vmul.f32 %v831_v12, %v191_v4  ;;  %v388_v15 = vpop.xlane.xlu1 %387  ;;  %vm200_vm2 = vweird.f32 %v831_v12 }
 0x120   :  { %834 = vrsqrt.f32 %v192_v13  ;;  %v390_v16 = vmul.f32 %v388_v15, %v1202_v22  ;;  %vm201_vm4 = vmor %vm199_vm3, %vm200_vm2  ;;  %vm209_vm9 = vweird.f32 %v192_v13 }
 0x121   :  { %v195_v17 = vmul.f32 %v831_v12, %v194_v14  ;;  %v825_v14 = vld [vmem:[%s1287_s10] ss:$0 sm:$0xff]  ;;  %s642_s10 = sshll.u32 %s1103_s6, 4  ;;  %s643_s10 = int_to_ptr.vmem [resolvable:$true] %s642_s10 }
 0x122   :  { %v833_v18 = vpop.eup %832  ;;  %v392_v19 = vadd.f32 1e-05, %v390_v16 }
 0x123   :  { %v196_v21 = vmul.f32 0.5, %v195_v17  ;;  %v394_v23 = vmul.f32 %v833_v18, %v391_v9  ;;  %vm400_vm5 = vweird.f32 %v833_v18 }
 0x124   :  { %836 = vrsqrt.f32 %v392_v19  ;;  %vm401_vm7 = vmor %vm399_vm6, %vm400_vm5  ;;  %vm409_vm12 = vweird.f32 %v392_v19 }
 0x125   :  { %v197_v24 = vsub.f32 1.5, %v196_v21  ;;  %v395_v25 = vmul.f32 %v833_v18, %v394_v23 }
 0x126   :  { %v835_v29 = vpop.eup %834 }
 0x127   :  { %v198_v30 = vmul.f32 %v831_v12, %v197_v24  ;;  %v396_v20 = vmul.f32 0.5, %v395_v25  ;;  %v204_v31 = vmul.f32 %v835_v29, %v192_v13  ;;  %vm210_vm8 = vweird.f32 %v835_v29 }
 0x128   :  { %vm211_vm10 = vmor %vm209_vm9, %vm210_vm8 }
 0x129   :  { %v397_v32 = vsub.f32 1.5, %v396_v20  ;;  %v205_v33 = vmul.f32 %v835_v29, %v204_v31  ;;  %v202_v22 = vsel %vm201_vm4, %v831_v12, %v198_v30 }
 0x12a   :  { %v837_v34 = vpop.eup %836  ;;  %v213_v43 = vmul.f32 %v202_v22, %v1206_v26  ;;  %v326_v26 = vld [vmem:[%s1285_s8] sm:$0x3] }
 0x12b   :  { %v398_v35 = vmul.f32 %v833_v18, %v397_v32  ;;  %v206_v37 = vmul.f32 0.5, %v205_v33  ;;  %v404_v40 = vmul.f32 %v837_v34, %v392_v19  ;;  %vm410_vm11 = vweird.f32 %v837_v34 }
 0x12c   :  { %v218_v52 = vmul.f32 %v822_v44, %v213_v43  ;;  %vm411_vm13 = vmor %vm409_vm12, %vm410_vm11  ;;  %v427_v60 = vperm.slane %v326_v26, 0  ;;  %v428_v0 = vperm.slane %v326_v26, 1 }
 0x12d   :  { %v207_v41 = vsub.f32 1.5, %v206_v37  ;;  %v405_v42 = vmul.f32 %v837_v34, %v404_v40  ;;  %v402_v46 = vsel %vm401_vm7, %v833_v18, %v398_v35 }
 0x12e   :  { %v413_v54 = vmul.f32 %v402_v46, %v1208_v27  ;;  %v414_v56 = vmul.f32 %v402_v46, %v1210_v28  ;;  %v223_v61 = vadd.f32 %v823_v53, %v218_v52 }
 0x12f   :  { %v208_v47 = vmul.f32 %v835_v29, %v207_v41  ;;  %v406_v48 = vmul.f32 0.5, %v405_v42 }
 0x130   :  { %v422_v63 = vmul.f32 %v418_v49, %v413_v54  ;;  %v423_v27 = vmul.f32 %v419_v57, %v414_v56 }
 0x131   :  { %v407_v50 = vsub.f32 1.5, %v406_v48  ;;  %v212_v51 = vsel %vm211_vm10, %v835_v29, %v208_v47  ;;  %vm622_vm10 = vcmask 130048  }
 0x132   :  { %v214_v55 = vmul.f32 %v212_v51, %v1219_v36  ;;  %v431_v28 = vadd.f32 %v427_v60, %v422_v63  ;;  %v432_v7 = vadd.f32 %v428_v0, %v423_v27 }
 0x133   :  { %v408_v58 = vmul.f32 %v837_v34, %v407_v50 }
 0x134   :  { %v219_v59 = vmul.f32 %v822_v44, %v214_v55 }
 0x135   :  { %v412_v62 = vsel %vm411_vm13, %v837_v34, %v408_v58 }
 0x136   :  { %v224_v1 = vadd.f32 %v823_v53, %v219_v59  ;;  %v415_v2 = vmul.f32 %v412_v62, %v1222_v38  ;;  %v416_v3 = vmul.f32 %v412_v62, %v1224_v39 }
 0x138   :  { %v225_v4 = vpack.c.bf16 %v224_v1, %v223_v61  ;;  %v424_v36 = vmul.f32 %v418_v49, %v415_v2  ;;  %v425_v5 = vmul.f32 %v419_v57, %v416_v3 }
 0x13a   :  { %285 = vmatmul.bf16.vlgmr.msra.gmra.mxu0 %v225_v4  ;;  %v433_v6 = vadd.f32 %v427_v60, %v424_v36  ;;  %v434_v8 = vadd.f32 %v428_v0, %v425_v5 }
 0x13c   :  { %v435_v9 = vpack.c.bf16 %v433_v6, %v431_v28  ;;  %v436_v10 = vpack.c.bf16 %v434_v8, %v432_v7  ;;  %v615_v7 = vstv %s614_s19 }
 0x13e   :  { %544 = vmatmul.bf16.vlgmr.msra.gmra.mxu1 %v435_v9  ;;  %558 = vmatmul.bf16.vlgmr.msra.gmra.mxu2 %v436_v10  ;;  %v619_v9 = vstv %s779_s12 }
 0x1b7   :  { %v286_v38 = vpop.f32.mrf.mxu0 }
 0x1b8   :  { %v287_v12 = vadd.f32 %v824_v11, %v286_v38 }
 0x1ba   :  { %v291_v39 = vmul.f32 %v287_v12, %v287_v12 }
 0x1bb   :  { %v545_v13 = vpop.f32.mrf.mxu1 }
 0x1bc   :  { %293 = vadd.xlane.f32.xlu2 %v291_v39  ;;  %v546_v16 = vadd.f32 %v825_v14, %v545_v13 }
 0x1bf   :  { %v288_v15 = vpop.f32.mrf.mxu0 }
 0x1c0   :  { %v289_v17 = vadd.f32 %v824_v11, %v288_v15 }
 0x1c1   :  { %v559_v18 = vpop.f32.mrf.mxu2 }
 0x1c2   :  { %v560_v19 = vadd.f32 %v559_v18, %v546_v16  ;;  %v292_v21 = vmul.f32 %v289_v17, %v289_v17 }
 0x1c3   :  { %v547_v24 = vpop.f32.mrf.mxu1 }
 0x1c4   :  { %295 = vadd.xlane.f32.xlu0 %v292_v21  ;;  %v564_v23 = vmul.f32 %v560_v19, %v560_v19  ;;  %v548_v25 = vadd.f32 %v825_v14, %v547_v24 }
 0x1c6   :  { %566 = vadd.xlane.f32.xlu1 %v564_v23 }
 0x1c9   :  { %v561_v29 = vpop.f32.mrf.mxu2 }
 0x1ca   :  { %v1254_v30 = vadd.f32 %v561_v29, %v548_v25 }
 0x1cc   :  { %v565_v20 = vmul.f32 %v1254_v30, %v1254_v30 }
 0x1ce   :  { %568 = vadd.xlane.f32.xlu2 %v565_v20 }
 0x22f   :  { %v294_v31 = vpop.xlane.xlu2 %293 }
 0x230   :  { %v297_v32 = vmax.f32 %v294_v31, 1e-24 }
 0x232   :  { %838 = vrsqrt.f32 %v297_v32  ;;  %vm305_vm15 = vweird.f32 %v297_v32 }
 0x237   :  { %v296_v33 = vpop.xlane.xlu0 %295 }
 0x238   :  { %v839_v34 = vpop.eup %838  ;;  %v298_v22 = vmax.f32 %v296_v33, 1e-24 }
 0x239   :  { %v300_v35 = vmul.f32 %v839_v34, %v297_v32  ;;  %v567_v37 = vpop.xlane.xlu1 %566  ;;  %vm306_vm14 = vweird.f32 %v839_v34 }
 0x23a   :  { %840 = vrsqrt.f32 %v298_v22  ;;  %v570_v40 = vmax.f32 %v567_v37, 1e-24  ;;  %vm307_vm0 = vmor %vm305_vm15, %vm306_vm14  ;;  %vm315_vm2 = vweird.f32 %v298_v22 }
 0x23b   :  { %v301_v41 = vmul.f32 %v839_v34, %v300_v35 }
 0x23c   :  { %842 = vrsqrt.f32 %v570_v40  ;;  %vm578_vm5 = vweird.f32 %v570_v40 }
 0x23d   :  { %v302_v42 = vmul.f32 0.5, %v301_v41 }
 0x23f   :  { %v303_v43 = vsub.f32 1.5, %v302_v42 }
 0x240   :  { %v841_v44 = vpop.eup %840 }
 0x241   :  { %v310_v45 = vmul.f32 %v841_v44, %v298_v22  ;;  %v569_v46 = vpop.xlane.xlu2 %568  ;;  %v304_v47 = vmul.f32 %v839_v34, %v303_v43  ;;  %vm316_vm1 = vweird.f32 %v841_v44 }
 0x242   :  { %v843_v48 = vpop.eup %842  ;;  %v571_v49 = vmax.f32 %v569_v46, 1e-24  ;;  %vm317_vm4 = vmor %vm315_vm2, %vm316_vm1 }
 0x243   :  { %v311_v50 = vmul.f32 %v841_v44, %v310_v45  ;;  %v573_v51 = vmul.f32 %v843_v48, %v570_v40  ;;  %v308_v52 = vsel %vm307_vm0, %v839_v34, %v304_v47  ;;  %vm579_vm3 = vweird.f32 %v843_v48 }
 0x244   :  { %844 = vrsqrt.f32 %v571_v49  ;;  %v319_v53 = vmul.f32 %v308_v52, %v287_v12  ;;  %vm580_vm6 = vmor %vm578_vm5, %vm579_vm3  ;;  %vm588_vm8 = vweird.f32 %v571_v49 }
 0x245   :  { %v312_v26 = vmul.f32 0.5, %v311_v50  ;;  %v574_v54 = vmul.f32 %v843_v48, %v573_v51 }
 0x246   :  { %594 = vst [vmem:[#allocation15] sm:$0xff] %v319_v53 }
 0x247   :  { %v313_v55 = vsub.f32 1.5, %v312_v26  ;;  %v575_v56 = vmul.f32 0.5, %v574_v54 }
 0x249   :  { %v576_v57 = vsub.f32 1.5, %v575_v56  ;;  %v314_v58 = vmul.f32 %v841_v44, %v313_v55 }
 0x24a   :  { %v845_v59 = vpop.eup %844 }
 0x24b   :  { %v583_v60 = vmul.f32 %v845_v59, %v571_v49  ;;  %v318_v61 = vsel %vm317_vm4, %v841_v44, %v314_v58  ;;  %v577_v62 = vmul.f32 %v843_v48, %v576_v57  ;;  %vm589_vm7 = vweird.f32 %v845_v59 }
 0x24c   :  { %v320_v63 = vmul.f32 %v318_v61, %v289_v17  ;;  %vm590_vm9 = vmor %vm588_vm8, %vm589_vm7 }
 0x24d   :  { %v584_v0 = vmul.f32 %v845_v59, %v583_v60  ;;  %v581_v1 = vsel %vm580_vm6, %v843_v48, %v577_v62 }
 0x24e   :  { %v599_v2 = vpack.c.bf16 %v320_v63, %v319_v53  ;;  %595 = vst [vmem:[#allocation15 + $0x8] sm:$0xff] %v320_v63  ;;  %v592_v3 = vmul.f32 %v581_v1, %v560_v19 }
 0x24f   :  { %v585_v27 = vmul.f32 0.5, %v584_v0  ;;  %637 = dma.vmem_to_hbm [thread:$0]  %s630_s18, 256, %s632_s16, [#allocation4], %s1094_s27, %s1094_s27, %s1095_s28  }
 0x250   :  { %607 = vmatpush.bf16.xpose.msra.mxu3 %v599_v2  ;;  %596 = vst [vmem:[#allocation16] sm:$0xff] %v592_v3 }
 0x251   :  { %v586_v4 = vsub.f32 1.5, %v585_v27 }
 0x253   :  { %v587_v36 = vmul.f32 %v845_v59, %v586_v4 }
 0x255   :  { %v591_v5 = vsel %vm590_vm9, %v845_v59, %v587_v36 }
 0x256   :  { %v593_v28 = vmul.f32 %v591_v5, %v1254_v30 }
 0x258   :  { %v598_v6 = vpack.c.bf16 %v593_v28, %v592_v3  ;;  %597 = vst [vmem:[#allocation16 + $0x8] sm:$0xff] %v593_v28 }
 0x259   :  { %650 = dma.vmem_to_hbm [thread:$0]  %s643_s10, 256, %s645_s14, [#allocation17], %s1094_s27, %s1094_s27, %s1095_s28  }
 0x25a   :  { %608 = vmatmul.bf16.vlgmr.msra.gmra.mxu3 %v598_v6 }
 0x2dd   :  { %v609_v8 = vpop.f32.mrf.mxu3 }
 0x2de   :  { %v616_v10 = vmul.f32 %v615_v7, %v609_v8 }
 0x2e0   :  { %v620_v11 = vadd.f32 %v619_v9, %v616_v10 }
 0x2e2   :  { %623 = vst.msk [vmem:[#allocation18] sm:$0xff] %vm622_vm10, %v620_v11 }
 0x2e5   :  { %v611_v38 = vpop.f32.mrf.mxu3 }
 0x2e6   :  { %v617_v12 = vmul.f32 %v615_v7, %v611_v38 }
 0x2e8   :  { %v621_v39 = vadd.f32 %v619_v9, %v617_v12 }
 0x2ea   :  { %624 = vst.msk [vmem:[#allocation18 + $0x8] sm:$0xff] %vm622_vm10, %v621_v39 }
 0x2eb   :  { %663 = dma.vmem_to_hbm [thread:$0]  %s656_s11, 256, %s658_s2, [#allocation17], %s1094_s27, %s1094_s27, %s1095_s28  }
 0x2ec   :  { %1084 = dma.done.wait [#allocation4], 256  }
 0x2ed   :  { %1085 = vsyncadd [#allocation4], 4294967040 }
 0x2ee   :  { %1086 = dma.done.wait [#allocation17], 512  }
 0x2ef   :  { %1087 = vsyncadd [#allocation17], 4294966784 }
 0x2f0   :  { %676 = vsyncpa [#allocation3], 1 }
 0x2f1   :  { %677 = vsyncpa [#allocation8], 1 }
 0x2f2   :  { %678 = vsyncpa [#allocation11], 1 }
 0x2f3   :  { %679 = vsyncpa [#allocation14], 1 }
 0x2f4   :  { %680 = vsyncpa [#allocation4], 1 }
 0x2f5   :  { %681 = vsyncpa [#allocation17], 1 }
 0x2f6   :  { %682 = vsyncpa [#allocation5], 1 }

</bundles_post_ra>
